<compile_context>
chip_gen: v7x
topology: tpu7x:2x2x1
jax: 0.10.0
libtpu: 0.0.40
codegen_flags: <defaults>
</compile_context>

<pallas_src>
import jax
import jax.numpy as jnp
from jax.experimental import pallas as pl
from jax.experimental.pallas import tpu as pltpu

N_POSE = 63
N_BETA = 10
HEAD_PAD = 128  # lane-dense fused head width (63 + 10 -> padded to 128)


def pointnet_encoder_kernel(x_ref, w1_ref, b1_ref, w2_ref, b2_ref,
                            w3_ref, b3_ref, wh_ref, bh_ref,
                            out_ref, gmax_ref):
    # x_ref : (tb, tn, 3) f32        w1: (3,64) f32       b1: (1,64) f32
    # w2    : (64,128) bf16          b2: (1,128) f32
    # w3    : (128,feat) bf16        b3: (1,feat) f32
    # wh    : (feat,128) bf16 fused+padded heads, bh: (1,128) f32
    # out   : (tb, 128) f32          gmax: (tb, feat) f32 running max scratch
    ni = pl.program_id(1)

    @pl.when(ni == 0)
    def _init():
        gmax_ref[...] = jnp.full(gmax_ref.shape, -jnp.inf, dtype=gmax_ref.dtype)

    x = x_ref[...]                       # (tb, tn, 3)
    tb, tn, _ = x.shape
    m = tb * tn
    w1 = w1_ref[...]                     # (3, 64)

    # ---- Layer 1: Conv1d(3,64,1)+ReLU as 3 VPU broadcast FMAs (no MXU). ----
    h = (x[:, :, 0:1] * w1[0:1, :]
         + x[:, :, 1:2] * w1[1:2, :]
         + x[:, :, 2:3] * w1[2:3, :]
         + b1_ref[...])                  # (tb, tn, 64)
    h = jnp.maximum(h, 0.0)
    h = h.reshape(m, 64)                 # flatten batch*points for 2-D MXU matmuls

    # ---- Layer 2: Conv1d(64,128,1)+ReLU, bf16 MXU / f32 accumulate. ----
    h = jnp.dot(h.astype(jnp.bfloat16), w2_ref[...],
                preferred_element_type=jnp.float32) + b2_ref[...]
    h = jnp.maximum(h, 0.0)              # (m, 128)

    # ---- Layer 3: Conv1d(128,feat,1)+ReLU. ----
    h = jnp.dot(h.astype(jnp.bfloat16), w3_ref[...],
                preferred_element_type=jnp.float32) + b3_ref[...]
    h = jnp.maximum(h, 0.0)              # (m, feat)

    # ---- Running max over the points in this tile. ----
    h = h.reshape(tb, tn, -1)
    gmax_ref[...] = jnp.maximum(gmax_ref[...], jnp.max(h, axis=1))

    # ---- Fused pose/beta heads on the last N step: one lane-dense matmul. ----
    @pl.when(ni == pl.num_programs(1) - 1)
    def _heads():
        g = gmax_ref[...]                # (tb, feat)
        out_ref[...] = (jnp.dot(g.astype(jnp.bfloat16), wh_ref[...],
                                preferred_element_type=jnp.float32)
                        + bh_ref[...])


def _vmem_limit_bytes(tb, tn, feat):
    """Size the scoped-VMEM limit from the actual tile footprint (cap 48 MiB)."""
    f32, bf16 = 4, 2
    x_tile = 2 * tb * tn * 8 * f32                          # double-buffered input (lane pad)
    weights = ((3 * 64 + 64) * f32
               + (64 * 128 + 128 * feat + feat * HEAD_PAD) * bf16
               + (128 + feat + HEAD_PAD) * f32)
    acts = tb * tn * (64 + 128 + feat) * f32                # layer intermediates (upper bound)
    out = 2 * tb * HEAD_PAD * f32
    scratch = tb * feat * f32
    est = x_tile + 2 * weights + acts + out + scratch
    return max(16 << 20, min(2 * int(est), 48 << 20))


def pointnet_encoder(x, params, *, tb=None, tn=None):
    """x: (B, N, 3) float32 point cloud (same layout the PyTorch forward takes)."""
    B, N, C = x.shape
    assert C == 3
    feat = params["w3"].shape[1]

    if tb is None:
        tb = B if (B <= 8 or B % 8 != 0) else 8
    if tn is None:
        tn = N if N <= 512 else 512
    # TODO(synk): N not divisible by tn would need -inf padding / masking in the max.
    assert B % tb == 0 and (tb == B or tb % 8 == 0)
    assert N % tn == 0 and (tn == N or tn % 8 == 0)

    # Fuse + pad the two heads into one lane-dense (feat, 128) weight.
    wh = jnp.zeros((feat, HEAD_PAD), jnp.float32)
    wh = wh.at[:, :N_POSE].set(params["wp"])
    wh = wh.at[:, N_POSE:N_POSE + N_BETA].set(params["wb"])
    bh = jnp.zeros((1, HEAD_PAD), jnp.float32)
    bh = bh.at[:, :N_POSE].set(params["bp"][0])
    bh = bh.at[:, N_POSE:N_POSE + N_BETA].set(params["bb"][0])

    # bf16 MXU operands (weights cast once in the wrapper; f32 accumulation in-kernel).
    w2 = params["w2"].astype(jnp.bfloat16)
    w3 = params["w3"].astype(jnp.bfloat16)
    wh = wh.astype(jnp.bfloat16)

    const = lambda bi, ni: (0, 0)  # weights/biases: resident across the whole grid
    grid = (B // tb, N // tn)

    out = pl.pallas_call(
        pointnet_encoder_kernel,
        out_shape=jax.ShapeDtypeStruct((B, HEAD_PAD), jnp.float32),
        grid_spec=pltpu.PrefetchScalarGridSpec(
            num_scalar_prefetch=0,
            grid=grid,
            in_specs=[
                pl.BlockSpec((tb, tn, 3), lambda bi, ni: (bi, ni, 0)),  # x
                pl.BlockSpec((3, 64), const),          # w1
                pl.BlockSpec((1, 64), const),          # b1
                pl.BlockSpec((64, 128), const),        # w2 (bf16)
                pl.BlockSpec((1, 128), const),         # b2
                pl.BlockSpec((128, feat), const),      # w3 (bf16)
                pl.BlockSpec((1, feat), const),        # b3
                pl.BlockSpec((feat, HEAD_PAD), const), # fused head weight (bf16)
                pl.BlockSpec((1, HEAD_PAD), const),    # fused head bias
            ],
            out_specs=pl.BlockSpec((tb, HEAD_PAD), lambda bi, ni: (bi, 0)),
            scratch_shapes=[pltpu.VMEM((tb, feat), jnp.float32)],
        ),
        compiler_params=pltpu.CompilerParams(
            dimension_semantics=("parallel", "arbitrary"),
            vmem_limit_bytes=_vmem_limit_bytes(tb, tn, feat),
        ),
    )(x, params["w1"], params["b1"], w2, params["b2"], w3, params["b3"], wh, bh)

    return out[:, :N_POSE], out[:, N_POSE:N_POSE + N_BETA]


def init_params(key, feat):
    """Deterministic PyTorch-style init. Weights stored pre-transposed (C_in, C_out)."""
    def linear_init(k, fan_in, fan_out):
        kw, kb = jax.random.split(k)
        bound = 1.0 / jnp.sqrt(fan_in)
        w = jax.random.uniform(kw, (fan_in, fan_out), jnp.float32, -bound, bound)
        b = jax.random.uniform(kb, (1, fan_out), jnp.float32, -bound, bound)
        return w, b

    keys = jax.random.split(key, 5)
    w1, b1 = linear_init(keys[0], 3, 64)       # Conv1d(3, 64, 1)
    w2, b2 = linear_init(keys[1], 64, 128)     # Conv1d(64, 128, 1)
    w3, b3 = linear_init(keys[2], 128, feat)   # Conv1d(128, feat, 1)
    wp, bp = linear_init(keys[3], feat, N_POSE)  # pose_fc
    wb, bb = linear_init(keys[4], feat, N_BETA)  # beta_fc
    return dict(w1=w1, b1=b1, w2=w2, b2=b2, w3=w3, b3=b3,
                wp=wp, bp=bp, wb=wb, bb=bb)


def reference_forward(x, p):
    """Pure-JAX f32 reference with the original module's semantics."""
    h = jax.nn.relu(jnp.einsum("bnc,cd->bnd", x, p["w1"]) + p["b1"])
    h = jax.nn.relu(jnp.einsum("bnc,cd->bnd", h, p["w2"]) + p["b2"])
    h = jax.nn.relu(jnp.einsum("bnc,cd->bnd", h, p["w3"]) + p["b3"])
    g = jnp.max(h, axis=1)
    return g @ p["wp"] + p["bp"], g @ p["wb"] + p["bb"]


if __name__ == "__main__":
    # Small demo shapes consistent with the module (feat is a ctor argument).
    B, N, FEAT = 2, 64, 128

    key = jax.random.PRNGKey(0)
    k_x, k_p = jax.random.split(key)
    x = jax.random.normal(k_x, (B, N, 3), dtype=jnp.float32)
    params = init_params(k_p, FEAT)

    # tn=16 -> 4 N-steps so the running-max accumulator path is exercised.
    pose, beta = pointnet_encoder(x, params, tn=16)
    pose = jax.block_until_ready(pose)
    beta = jax.block_until_ready(beta)

    pose_ref, beta_ref = reference_forward(x, params)
    assert pose.shape == (B, N_POSE) and beta.shape == (B, N_BETA)
    # bf16 MXU operands (f32 accumulation) vs f32 reference -> relaxed tolerance.
    assert jnp.allclose(pose, pose_ref, atol=2e-2, rtol=2e-2)
    assert jnp.allclose(beta, beta_ref, atol=2e-2, rtol=2e-2)

    print("KERNEL_OK")
</pallas_src>

<mosaic_0001>
module attributes {stable_mosaic.version = 11 : i64} {
  func.func @pointnet_encoder_kernel(%arg0: i32, %arg1: i32, %arg2: memref<2x16x3xf32, #tpu.memory_space<vmem>>, %arg3: memref<3x64xf32, #tpu.memory_space<vmem>>, %arg4: memref<1x64xf32, #tpu.memory_space<vmem>>, %arg5: memref<64x128xbf16, #tpu.memory_space<vmem>>, %arg6: memref<1x128xf32, #tpu.memory_space<vmem>>, %arg7: memref<128x128xbf16, #tpu.memory_space<vmem>>, %arg8: memref<1x128xf32, #tpu.memory_space<vmem>>, %arg9: memref<128x128xbf16, #tpu.memory_space<vmem>>, %arg10: memref<1x128xf32, #tpu.memory_space<vmem>>, %arg11: memref<2x128xf32, #tpu.memory_space<vmem>>, %arg12: memref<2x128xf32, #tpu.memory_space<vmem>>) attributes {dimension_semantics = [#tpu.dimension_semantics<parallel>, #tpu.dimension_semantics<arbitrary>], iteration_bounds = array<i64: 1, 4>, scalar_prefetch = 0 : i64, scratch_operands = 1 : i64, tpu.core_type = #tpu.core_type<tc>, window_params = [{transform_indices = @transform_0, window_bounds = array<i64: 2, 16, 3>}, {pipeline_mode = #tpu.pipeline_mode<synchronous>, transform_indices = @transform_1, window_bounds = array<i64: 3, 64>}, {pipeline_mode = #tpu.pipeline_mode<synchronous>, transform_indices = @transform_2, window_bounds = array<i64: 1, 64>}, {pipeline_mode = #tpu.pipeline_mode<synchronous>, transform_indices = @transform_3, window_bounds = array<i64: 64, 128>}, {pipeline_mode = #tpu.pipeline_mode<synchronous>, transform_indices = @transform_4, window_bounds = array<i64: 1, 128>}, {pipeline_mode = #tpu.pipeline_mode<synchronous>, transform_indices = @transform_5, window_bounds = array<i64: 128, 128>}, {pipeline_mode = #tpu.pipeline_mode<synchronous>, transform_indices = @transform_6, window_bounds = array<i64: 1, 128>}, {pipeline_mode = #tpu.pipeline_mode<synchronous>, transform_indices = @transform_7, window_bounds = array<i64: 128, 128>}, {pipeline_mode = #tpu.pipeline_mode<synchronous>, transform_indices = @transform_8, window_bounds = array<i64: 1, 128>}, {transform_indices = @transform_9, window_bounds = array<i64: 2, 128>}]} {
    %c0_i32 = arith.constant 0 : i32
    %0 = arith.cmpi eq, %arg1, %c0_i32 : i32
    %1 = arith.extui %0 : i1 to i32
    %c0_i32_0 = arith.constant 0 : i32
    %2 = arith.cmpi ne, %1, %c0_i32_0 : i32
    scf.if %2 {
      %cst_25 = arith.constant 0xFF800000 : f32
      %56 = vector.broadcast %cst_25 : f32 to vector<2x128xf32>
      %c0_26 = arith.constant 0 : index
      %c0_27 = arith.constant 0 : index
      %57 = vector.load %arg12[%c0_26, %c0_27] : memref<2x128xf32, #tpu.memory_space<vmem>>, vector<2x128xf32>
      tpu.vector_store %arg12[%c0_26, %c0_27], %56 {strides = array<i32>} : memref<2x128xf32, #tpu.memory_space<vmem>>, vector<2x128xf32>,
    } else {
    }
    %c0 = arith.constant 0 : index
    %c0_1 = arith.constant 0 : index
    %c0_2 = arith.constant 0 : index
    %3 = vector.load %arg2[%c0, %c0_1, %c0_2] : memref<2x16x3xf32, #tpu.memory_space<vmem>>, vector<2x16x3xf32>
    %c0_3 = arith.constant 0 : index
    %c0_4 = arith.constant 0 : index
    %4 = vector.load %arg3[%c0_3, %c0_4] : memref<3x64xf32, #tpu.memory_space<vmem>>, vector<3x64xf32>
    %5 = vector.extract_strided_slice %3 {offsets = [0, 0, 0], sizes = [2, 16, 1], strides = [1, 1, 1]} : vector<2x16x3xf32> to vector<2x16x1xf32>
    %6 = vector.extract_strided_slice %4 {offsets = [0, 0], sizes = [1, 64], strides = [1, 1]} : vector<3x64xf32> to vector<1x64xf32>
    %7 = vector.shape_cast %6 : vector<1x64xf32> to vector<1x1x64xf32>
    %8 = vector.broadcast %5 : vector<2x16x1xf32> to vector<2x16x64xf32>
    %9 = vector.broadcast %7 : vector<1x1x64xf32> to vector<2x16x64xf32>
    %10 = arith.mulf %8, %9 : vector<2x16x64xf32>
    %11 = vector.extract_strided_slice %3 {offsets = [0, 0, 1], sizes = [2, 16, 1], strides = [1, 1, 1]} : vector<2x16x3xf32> to vector<2x16x1xf32>
    %12 = vector.extract_strided_slice %4 {offsets = [1, 0], sizes = [1, 64], strides = [1, 1]} : vector<3x64xf32> to vector<1x64xf32>
    %13 = vector.shape_cast %12 : vector<1x64xf32> to vector<1x1x64xf32>
    %14 = vector.broadcast %11 : vector<2x16x1xf32> to vector<2x16x64xf32>
    %15 = vector.broadcast %13 : vector<1x1x64xf32> to vector<2x16x64xf32>
    %16 = arith.mulf %14, %15 : vector<2x16x64xf32>
    %17 = arith.addf %10, %16 : vector<2x16x64xf32>
    %18 = vector.extract_strided_slice %3 {offsets = [0, 0, 2], sizes = [2, 16, 1], strides = [1, 1, 1]} : vector<2x16x3xf32> to vector<2x16x1xf32>
    %19 = vector.extract_strided_slice %4 {offsets = [2, 0], sizes = [1, 64], strides = [1, 1]} : vector<3x64xf32> to vector<1x64xf32>
    %20 = vector.shape_cast %19 : vector<1x64xf32> to vector<1x1x64xf32>
    %21 = vector.broadcast %18 : vector<2x16x1xf32> to vector<2x16x64xf32>
    %22 = vector.broadcast %20 : vector<1x1x64xf32> to vector<2x16x64xf32>
    %23 = arith.mulf %21, %22 : vector<2x16x64xf32>
    %24 = arith.addf %17, %23 : vector<2x16x64xf32>
    %c0_5 = arith.constant 0 : index
    %c0_6 = arith.constant 0 : index
    %25 = vector.load %arg4[%c0_5, %c0_6] : memref<1x64xf32, #tpu.memory_space<vmem>>, vector<1x64xf32>
    %26 = vector.shape_cast %25 : vector<1x64xf32> to vector<1x1x64xf32>
    %27 = vector.broadcast %26 : vector<1x1x64xf32> to vector<2x16x64xf32>
    %28 = arith.addf %24, %27 : vector<2x16x64xf32>
    %cst = arith.constant 0.000000e+00 : f32
    %29 = vector.broadcast %cst : f32 to vector<2x16x64xf32>
    %30 = arith.maximumf %28, %29 : vector<2x16x64xf32>
    %31 = vector.shape_cast %30 : vector<2x16x64xf32> to vector<32x64xf32>
    %32 = arith.truncf %31 : vector<32x64xf32> to vector<32x64xbf16>
    %c0_7 = arith.constant 0 : index
    %c0_8 = arith.constant 0 : index
    %33 = vector.load %arg5[%c0_7, %c0_8] : memref<64x128xbf16, #tpu.memory_space<vmem>>, vector<64x128xbf16>
    %cst_9 = arith.constant dense<0.000000e+00> : vector<32x128xf32>
    %34 = tpu.matmul %32, %33, %cst_9 {dimension_numbers = #tpu.dot_dimension_numbers<[1], [0], [0], [1], [0, 0, 1, 1], [], []>} : vector<32x64xbf16>, vector<64x128xbf16>, vector<32x128xf32> -> vector<32x128xf32>
    %c0_10 = arith.constant 0 : index
    %c0_11 = arith.constant 0 : index
    %35 = vector.load %arg6[%c0_10, %c0_11] : memref<1x128xf32, #tpu.memory_space<vmem>>, vector<1x128xf32>
    %36 = vector.broadcast %35 : vector<1x128xf32> to vector<32x128xf32>
    %37 = arith.addf %34, %36 : vector<32x128xf32>
    %cst_12 = arith.constant 0.000000e+00 : f32
    %38 = vector.broadcast %cst_12 : f32 to vector<32x128xf32>
    %39 = arith.maximumf %37, %38 : vector<32x128xf32>
    %40 = arith.truncf %39 : vector<32x128xf32> to vector<32x128xbf16>
    %c0_13 = arith.constant 0 : index
    %c0_14 = arith.constant 0 : index
    %41 = vector.load %arg7[%c0_13, %c0_14] : memref<128x128xbf16, #tpu.memory_space<vmem>>, vector<128x128xbf16>
    %cst_15 = arith.constant dense<0.000000e+00> : vector<32x128xf32>
    %42 = tpu.matmul %40, %41, %cst_15 {dimension_numbers = #tpu.dot_dimension_numbers<[1], [0], [0], [1], [0, 0, 1, 1], [], []>} : vector<32x128xbf16>, vector<128x128xbf16>, vector<32x128xf32> -> vector<32x128xf32>
    %c0_16 = arith.constant 0 : index
    %c0_17 = arith.constant 0 : index
    %43 = vector.load %arg8[%c0_16, %c0_17] : memref<1x128xf32, #tpu.memory_space<vmem>>, vector<1x128xf32>
    %44 = vector.broadcast %43 : vector<1x128xf32> to vector<32x128xf32>
    %45 = arith.addf %42, %44 : vector<32x128xf32>
    %cst_18 = arith.constant 0.000000e+00 : f32
    %46 = vector.broadcast %cst_18 : f32 to vector<32x128xf32>
    %47 = arith.maximumf %45, %46 : vector<32x128xf32>
    %48 = vector.shape_cast %47 : vector<32x128xf32> to vector<2x16x128xf32>
    %c0_19 = arith.constant 0 : index
    %c0_20 = arith.constant 0 : index
    %49 = vector.load %arg12[%c0_19, %c0_20] : memref<2x128xf32, #tpu.memory_space<vmem>>, vector<2x128xf32>
    %cst_21 = arith.constant dense<0xFF800000> : vector<2x128xf32>
    %50 = vector.multi_reduction <maximumf>, %48, %cst_21 [1] : vector<2x16x128xf32> to vector<2x128xf32>
    %51 = arith.maximumf %49, %50 : vector<2x128xf32>
    %c0_22 = arith.constant 0 : index
    %c0_23 = arith.constant 0 : index
    %52 = vector.load %arg12[%c0_22, %c0_23] : memref<2x128xf32, #tpu.memory_space<vmem>>, vector<2x128xf32>
    tpu.vector_store %arg12[%c0_22, %c0_23], %51 {strides = array<i32>} : memref<2x128xf32, #tpu.memory_space<vmem>>, vector<2x128xf32>,
    %c3_i32 = arith.constant 3 : i32
    %53 = arith.cmpi eq, %arg1, %c3_i32 : i32
    %54 = arith.extui %53 : i1 to i32
    %c0_i32_24 = arith.constant 0 : i32
    %55 = arith.cmpi ne, %54, %c0_i32_24 : i32
    scf.if %55 {
      %c0_25 = arith.constant 0 : index
      %c0_26 = arith.constant 0 : index
      %56 = vector.load %arg12[%c0_25, %c0_26] : memref<2x128xf32, #tpu.memory_space<vmem>>, vector<2x128xf32>
      %57 = arith.truncf %56 : vector<2x128xf32> to vector<2x128xbf16>
      %c0_27 = arith.constant 0 : index
      %c0_28 = arith.constant 0 : index
      %58 = vector.load %arg9[%c0_27, %c0_28] : memref<128x128xbf16, #tpu.memory_space<vmem>>, vector<128x128xbf16>
      %cst_29 = arith.constant dense<0.000000e+00> : vector<2x128xf32>
      %59 = tpu.matmul %57, %58, %cst_29 {dimension_numbers = #tpu.dot_dimension_numbers<[1], [0], [0], [1], [0, 0, 1, 1], [], []>} : vector<2x128xbf16>, vector<128x128xbf16>, vector<2x128xf32> -> vector<2x128xf32>
      %c0_30 = arith.constant 0 : index
      %c0_31 = arith.constant 0 : index
      %60 = vector.load %arg10[%c0_30, %c0_31] : memref<1x128xf32, #tpu.memory_space<vmem>>, vector<1x128xf32>
      %61 = vector.broadcast %60 : vector<1x128xf32> to vector<2x128xf32>
      %62 = arith.addf %59, %61 : vector<2x128xf32>
      %c0_32 = arith.constant 0 : index
      %c0_33 = arith.constant 0 : index
      %63 = vector.load %arg11[%c0_32, %c0_33] : memref<2x128xf32, #tpu.memory_space<vmem>>, vector<2x128xf32>
      tpu.vector_store %arg11[%c0_32, %c0_33], %62 {strides = array<i32>} : memref<2x128xf32, #tpu.memory_space<vmem>>, vector<2x128xf32>,
    } else {
    }
    return
  }
  func.func @transform_0(%arg0: i32, %arg1: i32) -> (i32, i32, i32) {
    %c0_i32 = arith.constant 0 : i32
    %c0_i32_0 = arith.constant 0 : i32
    return %arg0, %arg1, %c0_i32 : i32, i32, i32
  }
  func.func @transform_1(%arg0: i32, %arg1: i32) -> (i32, i32) {
    %c0_i32 = arith.constant 0 : i32
    %c0_i32_0 = arith.constant 0 : i32
    %c0_i32_1 = arith.constant 0 : i32
    return %c0_i32, %c0_i32_0 : i32, i32
  }
  func.func @transform_2(%arg0: i32, %arg1: i32) -> (i32, i32) {
    %c0_i32 = arith.constant 0 : i32
    %c0_i32_0 = arith.constant 0 : i32
    %c0_i32_1 = arith.constant 0 : i32
    return %c0_i32, %c0_i32_0 : i32, i32
  }
  func.func @transform_3(%arg0: i32, %arg1: i32) -> (i32, i32) {
    %c0_i32 = arith.constant 0 : i32
    %c0_i32_0 = arith.constant 0 : i32
    %c0_i32_1 = arith.constant 0 : i32
    return %c0_i32, %c0_i32_0 : i32, i32
  }
  func.func @transform_4(%arg0: i32, %arg1: i32) -> (i32, i32) {
    %c0_i32 = arith.constant 0 : i32
    %c0_i32_0 = arith.constant 0 : i32
    %c0_i32_1 = arith.constant 0 : i32
    return %c0_i32, %c0_i32_0 : i32, i32
  }
  func.func @transform_5(%arg0: i32, %arg1: i32) -> (i32, i32) {
    %c0_i32 = arith.constant 0 : i32
    %c0_i32_0 = arith.constant 0 : i32
    %c0_i32_1 = arith.constant 0 : i32
    return %c0_i32, %c0_i32_0 : i32, i32
  }
  func.func @transform_6(%arg0: i32, %arg1: i32) -> (i32, i32) {
    %c0_i32 = arith.constant 0 : i32
    %c0_i32_0 = arith.constant 0 : i32
    %c0_i32_1 = arith.constant 0 : i32
    return %c0_i32, %c0_i32_0 : i32, i32
  }
  func.func @transform_7(%arg0: i32, %arg1: i32) -> (i32, i32) {
    %c0_i32 = arith.constant 0 : i32
    %c0_i32_0 = arith.constant 0 : i32
    %c0_i32_1 = arith.constant 0 : i32
    return %c0_i32, %c0_i32_0 : i32, i32
  }
  func.func @transform_8(%arg0: i32, %arg1: i32) -> (i32, i32) {
    %c0_i32 = arith.constant 0 : i32
    %c0_i32_0 = arith.constant 0 : i32
    %c0_i32_1 = arith.constant 0 : i32
    return %c0_i32, %c0_i32_0 : i32, i32
  }
  func.func @transform_9(%arg0: i32, %arg1: i32) -> (i32, i32) {
    %c0_i32 = arith.constant 0 : i32
    %c0_i32_0 = arith.constant 0 : i32
    return %arg0, %c0_i32 : i32, i32
  }
}

</mosaic_0001>

<bundles_post_ra>
// kernel: tpu_custom_call.1
= control target key start
LH: loop header
LB: loop body
LE: loop exit
PB: predicated region body
PF: predicated region fallthrough
CT: control target
= control target key end

     0   :  { %14 = vsyncpa [#allocation5], 0  ;;  %s1538_s0 = inlined_call_operand.vmem [shape: f32[2,64,3], index: 0, kind: input, shape index: {}]   ;;  %s1539_s1 = inlined_call_operand.vmem [shape: f32[3,64], index: 1, kind: input, shape index: {}]   ;;  %s1540_s2 = inlined_call_operand.vmem [shape: f32[1,64], index: 2, kind: input, shape index: {}]   ;;  %s1541_s3 = inlined_call_operand.hbm [shape: bf16[64,128], index: 3, kind: input, shape index: {}]   ;;  %s1542_s4 = inlined_call_operand.vmem [shape: f32[1,128], index: 4, kind: input, shape index: {}]   ;;  %s1543_s5 = inlined_call_operand.vmem [shape: bf16[128,128], index: 5, kind: input, shape index: {}]   ;;  %s1544_s6 = inlined_call_operand.vmem [shape: f32[1,128], index: 6, kind: input, shape index: {}]   ;;  %s1545_s7 = inlined_call_operand.vmem [shape: bf16[128,128], index: 7, kind: input, shape index: {}]   ;;  %s1546_s8 = inlined_call_operand.vmem [shape: f32[1,128], index: 8, kind: input, shape index: {}]   ;;  %s1547_s9 = inlined_call_operand.hbm [shape: f32[2,128], index: 9, kind: output, shape index: {}]  }
   0x1   :  { %15 = vsyncpa [#allocation6], 0  ;;  %s1337_s30 = smov 0   ;;  %s1339_s10 = smov 0  }
   0x2   :  { %s1341_s11 = smov 0   ;;  %s1343_s12 = smov 0  }
   0x3   :  { %s1345_s13 = smov 0  }
   0x4 LB: > { %s1551_s14 = sadd.s32 4294967295, %s1275_s13   ;;  %s30_s15 = sadd.s32 1, %s1271_s12  ;;  %s1275_s13 = sphi %s1345_s13, %s21_s13   ;;  %s1271_s12 = sphi %s1343_s12, %s1567_s12   ;;  %s1267_s11 = sphi %s1341_s11, %s1566_s11   ;;  %s1263_s10 = sphi %s1339_s10, %s1565_s10   ;;  %s1259_s30 = sphi %s1337_s30, %s1564_s30  }
   0x5   : > { %p31_p0 = scmp.ge.s32.totalorder %s30_s15, 4  ;;  %s42_s16 = sadd.s32 1, %s1263_s10 }
   0x6   : > { %p49_p1 = scmp.ne.s32.totalorder %s1263_s10, %s1259_s30  ;;  %p50_p2 = scmp.eq.s32.totalorder %s1275_s13, 0 }
   0x7   : > { %s1569_s15 = smov (%p31_p0, %s30_s15), 0  ;;  %p963_p4 = scmp.ge.s32.totalorder %s1275_s13, 1 }
   0x8   : > { %1553 = sst [smem:[#allocation10_spill]] %s1569_s15  ;;  %p1370_p3 = por %p50_p2, %p49_p1 }
   0x9   : > { %s38_s18 = ssub.s32 %s1271_s12, %s1569_s15  ;;  %p260_p5 = scmp.lt.s32.totalorder %s1275_s13, 5 }
   0xa   : > { %s1554_s17 = scalar_select %p1370_p3, 1, 0 }
   0xb   : > { %p40_p6 = scmp.eq.s32.totalorder %s38_s18, 0  ;;  %p1378_p7 = pnand %p963_p4, %p260_p5 }
   0xc   : > { %p1384_p8 = scmp.eq.s32.totalorder %s1551_s14, 0  ;;  %s1277_s22 = smov [#allocation4]  }
   0xd   : > { %s1555_s19 = scalar_select %p1378_p7, 1, 0 }
   0xe   : > { %s1556_s20 = scalar_select %p1384_p8, 1, 0 }
   0xf   : > { %s1389_s21 = scalar_select %p40_p6, %s1263_s10, %s42_s16  }
  0x10   : > { %p1090_p9 = pneg %p1378_p7  ;;  %s278_s23 = sshll.u32 %s1277_s22, 4  ;;  %s279_s23 = int_to_ptr.vmem [resolvable:$true] %s278_s23 }
  0x11   : > { %s1175_s27 = scalar_lea.hbm %s1541_s3, 512 }
  0x12   : > { %p1395_p10 = pnand %p1384_p8, %p1090_p9  ;;  %p1176_p11 = scmp.ne.s32.totalorder %s1541_s3, %s1175_s27 }
  0x13   : > { %p1182_p1 = scmp.lt.u32.totalorder %s1175_s27, %s1541_s3 }
  0x14   : > { %p1177_p12 = pneg %p1395_p10 }
  0x16   : > { %p1178_p13 = pnand %p1177_p12, %p1176_p11 }
  0x18   : > { %p1179_p0 = pneg %p1178_p13 }
  0x1a   : > { %p1184_p2 = pnand %p1182_p1, %p1179_p0 }
  0x1c   : > { %1187 = shalt.err (!%p1184_p2)
}
  0x1d   : > { %s1188_s22 = scalar_lea.vmem %s279_s23, 512  ;;  %p1196_p9 = scmp.lt.s32.totalorder %s279_s23, %s279_s23 }
  0x1e   : > { %p1189_p4 = scmp.ne.s32.totalorder %s279_s23, %s1188_s22  ;;  %p1197_p8 = scmp.lt.s32.totalorder %s1188_s22, %s1188_s22 }
  0x20   : > { %p1191_p5 = pnand %p1189_p4, %p1177_p12  ;;  %p1198_p7 = por %p1197_p8, %p1196_p9 }
  0x22   : > { %p1192_p6 = pneg %p1191_p5 }
  0x24   : > { %p1199_p3 = pnand %p1198_p7, %p1192_p6 }
  0x26   : > { %1202 = shalt.err (!%p1199_p3)
}
  0x27   : > { %s1278_s25 = smov 64   ;;  %s1279_s26 = smov 4  }
  0x28   : > { %1093 = dma.hbm_to_vmem [thread:$0]  (!%p1395_p10), %s1541_s3, 512, %s279_s23, [#allocation5], %s1278_s25, %s1278_s25, %s1279_s26  }
  0x29   : > { %p965_p11 = scmp.ge.s32.totalorder %s1275_s13, 4 }
  0x2a   : > { %p1558_p13 = scmp.ne.s32.totalorder (!%p965_p11), %s1554_s17, 0 }
  0x2b   : > { %303 = sbr.rel (%p965_p11) target bundleno = 57 (0x39), region = 48 }
  0x32   : > { %306 = sbr.rel (!%p1558_p13) target bundleno = 57 (0x39), region = 52  ;;  %s308_s27 = sand.u32 (%p1558_p13), 1, %s1263_s10  }
  0x33   : > { %s1004_s16 = sshll.u32 (%p1558_p13), %s1271_s12, 4  ;;  %s966_s18 = sshll.u32 (%p1558_p13), %s308_s27, 5 }
  0x34   : > { %s316_s15 = scalar_lea.vmem (%p1558_p13), %s1538_s0, %s1004_s16  ;;  %s310_s24 = scalar_lea.vmem (%p1558_p13), [#allocation3], %s966_s18 }
  0x35   : > { %v350_v0 = vld [vmem:[%s316_s15] sm:$0xff] (%p1558_p13)  ;;  %v352_v1 = vld [vmem:[%s316_s15 + $0x8] sm:$0xff] (%p1558_p13) }
  0x36   : > { %v354_v2 = vld [vmem:[%s316_s15 + $0x40] sm:$0xff] (%p1558_p13)  ;;  %351 = vst [vmem:[%s310_s24] sm:$0xff] (%p1558_p13), %v350_v0  ;;  %353 = vst [vmem:[%s310_s24 + $0x8] sm:$0xff] (%p1558_p13), %v352_v1  ;;  %v356_v3 = vld [vmem:[%s316_s15 + $0x48] sm:$0xff] (%p1558_p13) }
  0x37   : > { %355 = vst [vmem:[%s310_s24 + $0x10] sm:$0xff] (%p1558_p13), %v354_v2  ;;  %357 = vst [vmem:[%s310_s24 + $0x18] sm:$0xff] (%p1558_p13), %v356_v3 }
  0x39 PF: > { %p1559_p3 = scmp.ne.s32.totalorder %s1555_s19, 0 }
  0x3a   : > { %s369_s17 = sand.u32 (!%p1559_p3), 1, %s1259_s30   ;;  %p1560_p7 = scmp.ne.s32.totalorder (!%p1559_p3), %s1556_s20, 0 }
  0x3b   : > { %366 = sbr.rel (%p1559_p3) target bundleno = 951 (0x3b7), region = 90  ;;  %s970_s23 = sshll.u32 (!%p1559_p3), %s369_s17, 5 }
  0x3c   : > { %s371_s14 = scalar_lea.vmem (!%p1559_p3), [#allocation3], %s970_s23 }
  0x42   : > { %1250 = dma.done.wait (%p1560_p7), [#allocation5], 512  }
  0x43   : > { %1252 = vsyncadd (%p1560_p7), [#allocation5], 4294966784  ;;  %p972_p8 = scmp.ne.s32.totalorder %s1267_s11, 0 }
  0x44   : > { %v1280_v4 = vmov (!%p972_p8), -inf  }
  0x45   : > { %409 = sbr.rel (%p972_p8) target bundleno = 76 (0x4c), region = 102  ;;  %410 = vst [vmem:[#allocation2] sm:$0x3] (!%p972_p8), %v1280_v4 }
  0x4c PF: > { %v411_v5 = vld [vmem:[%s371_s14] sm:$0xff]  ;;  %v1281_v6 = vmov 1   ;;  %v1282_v7 = vmov 0   ;;  %v412_v8 = vld [vmem:[%s371_s14 + $0x8] sm:$0xff]  ;;  %v413_v9 = vld [vmem:[%s371_s14 + $0x10] sm:$0xff]  ;;  %v1283_v11 = vmov 2   ;;  %v436_v22 = vlaneseq }
  0x4d   : > { %1149 = vset.pattern.permute.xlu1 %v1281_v6  ;;  %1148 = vset.pattern.permute.xlu0 %v1282_v7  ;;  %v414_v10 = vld [vmem:[%s371_s14 + $0x18] sm:$0xff]  ;;  %v1155_v12 = vld [vmem:[#allocation4] sm:$0xff]   ;;  %v1156_v13 = vld [vmem:[#allocation4 + $0x8] sm:$0xff]   ;;  %vm556_vm0 = vcmask 523264   ;;  %vm759_vm1 = vcmask 1041409   ;;  %p990_p10 = scmp.ne.s32.totalorder %s1267_s11, 3 }
  0x4e   : > { %445 = vperm.xlu1 %1149, %v411_v5   ;;  %418 = vperm.xlu0 %1148, %v411_v5   ;;  %v1157_v14 = vld [vmem:[#allocation4 + $0x10] sm:$0xff]   ;;  %v1158_v15 = vld [vmem:[#allocation4 + $0x18] sm:$0xff]   ;;  %v1160_v17 = vld [vmem:[%s1543_s5 + $0x8] sm:$0xff]   ;;  %v437_v25 = vshrl.u32 %v436_v22, 7  ;;  %vm1285_vm2 = vmmov (!%p990_p10), 0  }
  0x4f   : > { %1030 = vmatprep.subr.bf16.mxu0 %v1155_v12  ;;  %v1159_v16 = vld [vmem:[%s1543_s5] sm:$0xff]   ;;  %v1161_v18 = vld [vmem:[%s1543_s5 + $0x10] sm:$0xff]   ;;  %v1162_v19 = vld [vmem:[%s1543_s5 + $0x18] sm:$0xff]  }
  0x50   : > { %1031 = vmatpush3.bf16.msra.mxu0 %v1155_v12  ;;  %1042 = vmatprep.subr.bf16.mxu1 %v1159_v16  ;;  %v1163_v20 = vld [vmem:[%s1543_s5 + $0x20] sm:$0xff]   ;;  %v1164_v21 = vld [vmem:[%s1543_s5 + $0x28] sm:$0xff]   ;;  %v462_v28 = vsub.s32 1, %v437_v25  ;;  %v438_v29 = vsub.s32 0, %v437_v25  ;;  %v490_v33 = vsub.s32 2, %v437_v25 }
  0x51   : > { %1032 = vmatprep.subr.bf16.mxu0 %v1156_v13  ;;  %1043 = vmatpush3.bf16.msra.mxu1 %v1159_v16  ;;  %v415_v31 = vld [vmem:[%s1539_s1] sm:$0x7] }
  0x52   : > { %449 = vperm.xlu1 %1149, %v412_v8   ;;  %423 = vperm.xlu0 %1148, %v412_v8   ;;  %v463_v34 = vrot.slane %v415_v31, %v462_v28  ;;  %v439_v35 = vrot.slane %v415_v31, %v438_v29  ;;  %v491_v40 = vrot.slane %v415_v31, %v490_v33  ;;  %v973_v50 = vld [vmem:[%s1540_s2] ss:$0 sm:$0xff] }
  0x53   : > { %1044 = vmatprep.subr.bf16.mxu1 %v1160_v17  ;;  %v974_v12 = vld [vmem:[%s1542_s4] ss:$0 sm:$0xff] }
  0x54   : > { %1033 = vmatpush3.bf16.msra.mxu0 %v1156_v13 }
  0x55   : > { %1034 = vmatprep.subr.bf16.mxu0 %v1157_v14  ;;  %1045 = vmatpush3.bf16.msra.mxu1 %v1160_v17 }
  0x56   : > { %1150 = vset.pattern.permute.xlu1 %v1282_v7  ;;  %428 = vperm.xlu0 %1148, %v413_v9  }
  0x57   : > { %433 = vperm.xlu1 %1150, %v414_v10   ;;  %1046 = vmatprep.subr.bf16.mxu1 %v1161_v18 }
  0x58   : > { %1035 = vmatpush3.bf16.msra.mxu0 %v1157_v14 }
  0x59   : > { %1036 = vmatprep.subr.bf16.mxu0 %v1158_v15  ;;  %1047 = vmatpush3.bf16.msra.mxu1 %v1161_v18 }
  0x5a   : > { %1151 = vset.pattern.permute.xlu0 %v1281_v6  ;;  %1048 = vmatprep.subr.bf16.mxu1 %v1162_v19 }
  0x5b   : > { %1152 = vset.pattern.permute.xlu1 %v1281_v6  ;;  %453 = vperm.xlu0 %1151, %v413_v9  }
  0x5c   : > { %457 = vperm.xlu1 %1152, %v414_v10   ;;  %1037 = vmatpush3.bf16.msra.mxu0 %v1158_v15 }
  0x5d   : > { %1049 = vmatpush3.bf16.msra.mxu1 %v1162_v19 }
  0x5e   : > { %1050 = vmatprep.subr.bf16.mxu1 %v1163_v20 }
  0x5f   : > { %1154 = vset.pattern.permute.xlu0 %v1283_v11 }
  0x60   : > { %1153 = vset.pattern.permute.xlu1 %v1283_v11  ;;  %477 = vperm.xlu0 %1154, %v412_v8   ;;  %v1166_v11 = vld [vmem:[%s1543_s5 + $0x38] sm:$0xff]  }
  0x61   : > { %473 = vperm.xlu1 %1153, %v411_v5   ;;  %1051 = vmatpush3.bf16.msra.mxu1 %v1163_v20 }
  0x62   : > { %1052 = vmatprep.subr.bf16.mxu1 %v1164_v21 }
  0x65   : > { %481 = vperm.xlu1 %1153, %v413_v9   ;;  %1053 = vmatpush3.bf16.msra.mxu1 %v1164_v21 }
  0x69   : > { %485 = vperm.xlu1 %1153, %v414_v10   ;;  %v1165_v10 = vld [vmem:[%s1543_s5 + $0x30] sm:$0xff]  }
  0x6a   : > { %1054 = vmatprep.subr.bf16.mxu1 %v1165_v10 }
  0x6b   : > { %1055 = vmatpush3.bf16.msra.mxu1 %v1165_v10 }
  0x6c   : > { %1056 = vmatprep.subr.bf16.mxu1 %v1166_v11 }
  0x6f   : > { %1057 = vmatpush3.bf16.msra.mxu1 %v1166_v11 }
  0xcd   : > { %v446_v23 = vpop.permute.xlu1 %445  ;;  %v419_v24 = vpop.permute.xlu0 %418 }
  0xce   : > { %v464_v41 = vmul.f32 %v463_v34, %v446_v23  ;;  %v440_v42 = vmul.f32 %v439_v35, %v419_v24 }
  0xd0   : > { %v468_v47 = vadd.f32 %v464_v41, %v440_v42 }
  0xd1   : > { %v450_v26 = vpop.permute.xlu1 %449  ;;  %v424_v27 = vpop.permute.xlu0 %423 }
  0xd2   : > { %v465_v38 = vmul.f32 %v463_v34, %v450_v26  ;;  %v441_v39 = vmul.f32 %v439_v35, %v424_v27  ;;  %v981_v27 = vld [vmem:[%s1544_s6] ss:$0 sm:$0xff] }
  0xd4   : > { %v469_v44 = vadd.f32 %v465_v38, %v441_v39 }
  0xd5   : > { %v429_v30 = vpop.permute.xlu0 %428 }
  0xd6   : > { %v434_v32 = vpop.permute.xlu1 %433  ;;  %v442_v52 = vmul.f32 %v439_v35, %v429_v30 }
  0xd7   : > { %v443_v61 = vmul.f32 %v439_v35, %v434_v32 }
  0xda   : > { %v454_v36 = vpop.permute.xlu0 %453 }
  0xdb   : > { %v458_v37 = vpop.permute.xlu1 %457  ;;  %v466_v48 = vmul.f32 %v463_v34, %v454_v36 }
  0xdc   : > { %v467_v57 = vmul.f32 %v463_v34, %v458_v37 }
  0xdd   : > { %v470_v56 = vadd.f32 %v466_v48, %v442_v52 }
  0xde   : > { %v471_v1 = vadd.f32 %v467_v57, %v443_v61  ;;  %v1167_v57 = vld [vmem:[%s1545_s7] sm:$0xff] (!%p990_p10)   ;;  %v1170_v61 = vld [vmem:[%s1545_s7 + $0x18] sm:$0xff] (!%p990_p10)  }
  0xdf   : > { %v478_v43 = vpop.permute.xlu0 %477 }
  0xe0   : > { %v493_v45 = vmul.f32 %v491_v40, %v478_v43  ;;  %v474_v46 = vpop.permute.xlu1 %473 }
  0xe1   : > { %v492_v49 = vmul.f32 %v491_v40, %v474_v46 }
  0xe2   : > { %v497_v51 = vadd.f32 %v493_v45, %v469_v44 }
  0xe3   : > { %v496_v53 = vadd.f32 %v492_v49, %v468_v47 }
  0xe4   : > { %v482_v54 = vpop.permute.xlu1 %481  ;;  %v508_v55 = vadd.f32 %v973_v50, %v497_v51 }
  0xe5   : > { %v494_v58 = vmul.f32 %v491_v40, %v482_v54  ;;  %v507_v59 = vadd.f32 %v973_v50, %v496_v53  ;;  %v742_v53 = vld [vmem:[#allocation2] sm:$0x3] }
  0xe6   : > { %v512_v60 = vmax.f32 %v508_v55, 0.0 }
  0xe7   : > { %v498_v62 = vadd.f32 %v494_v58, %v470_v56  ;;  %v511_v63 = vmax.f32 %v507_v59, 0.0  ;;  %v1284_v58 = vmov (!%p990_p10), 0.0   ;;  %v1168_v59 = vld [vmem:[%s1545_s7 + $0x8] sm:$0xff] (!%p990_p10)  }
  0xe8   : > { %v486_v0 = vpop.permute.xlu1 %485  ;;  %1062 = vmatprep.subr.bf16.mxu0 (!%p990_p10), %v1284_v58 }
  0xe9   : > { %v495_v2 = vmul.f32 %v491_v40, %v486_v0  ;;  %v515_v3 = vpack.c.bf16 %v512_v60, %v511_v63  ;;  %v509_v4 = vadd.f32 %v973_v50, %v498_v62  ;;  %v1169_v60 = vld [vmem:[%s1545_s7 + $0x10] sm:$0xff] (!%p990_p10)   ;;  %v1171_v62 = vld [vmem:[%s1545_s7 + $0x20] sm:$0xff] (!%p990_p10)   ;;  %v1172_v63 = vld [vmem:[%s1545_s7 + $0x28] sm:$0xff] (!%p990_p10)  }
  0xea   : > { %v1173_v0 = vld [vmem:[%s1545_s7 + $0x30] sm:$0xff] (!%p990_p10)  }
  0xeb   : > { %v499_v5 = vadd.f32 %v495_v2, %v471_v1  ;;  %1038 = vmatprep.mubr.msk.bf16.mxu0 %vm556_vm0, %v515_v3  ;;  %v513_v7 = vmax.f32 %v509_v4, 0.0  ;;  %v1174_v1 = vld [vmem:[%s1545_s7 + $0x38] sm:$0xff] (!%p990_p10)   ;;  %v991_v4 = vld [vmem:[%s1546_s8] ss:$0 sm:$0xff] (!%p990_p10) }
  0xed   : > { %v510_v6 = vadd.f32 %v973_v50, %v499_v5 }
  0xef   : > { %v514_v8 = vmax.f32 %v510_v6, 0.0 }
  0xf1   : > { %v516_v9 = vpack.c.bf16 %v514_v8, %v513_v7 }
  0xf3   : > { %1039 = vmatmul.mubr.msk.bf16.vlgmr.msra.gmra.mrb[0].mxu0 %vm556_vm0, %v516_v9 }
  0xf4   : > { %1063 = vmatpush3.bf16.msra.mxu0 (!%p990_p10), %v1167_v57  ;;  %1078 = vmatprep.mubr.msk.bf16.mxu0 (!%p990_p10), %vm1285_vm2, %v1284_v58 }
  0xf5   : > { %1064 = vmatprep.subr.bf16.mxu0 (!%p990_p10), %v1284_v58 }
  0xf8   : > { %1065 = vmatpush3.bf16.msra.mxu0 (!%p990_p10), %v1168_v59 }
  0xf9   : > { %1066 = vmatprep.subr.bf16.mxu0 (!%p990_p10), %v1284_v58 }
  0xfc   : > { %1067 = vmatpush3.bf16.msra.mxu0 (!%p990_p10), %v1169_v60 }
  0xfd   : > { %1068 = vmatprep.subr.bf16.mxu0 (!%p990_p10), %v1284_v58 }
 0x100   : > { %1069 = vmatpush3.bf16.msra.mxu0 (!%p990_p10), %v1170_v61 }
 0x101   : > { %1070 = vmatprep.subr.bf16.mxu0 (!%p990_p10), %v1284_v58 }
 0x104   : > { %1071 = vmatpush3.bf16.msra.mxu0 (!%p990_p10), %v1171_v62 }
 0x105   : > { %1072 = vmatprep.subr.bf16.mxu0 (!%p990_p10), %v1284_v58 }
 0x108   : > { %1073 = vmatpush3.bf16.msra.mxu0 (!%p990_p10), %v1172_v63 }
 0x109   : > { %1074 = vmatprep.subr.bf16.mxu0 (!%p990_p10), %v1284_v58 }
 0x10c   : > { %1075 = vmatpush3.bf16.msra.mxu0 (!%p990_p10), %v1173_v0 }
 0x10d   : > { %1076 = vmatprep.subr.bf16.mxu0 (!%p990_p10), %v1284_v58 }
 0x110   : > { %1077 = vmatpush3.bf16.msra.mxu0 (!%p990_p10), %v1174_v1 }
 0x1c6   : > { %v1040_v13 = vpop.f32.mrb[0].mxu0 }
 0x1c7   : > { %v606_v14 = vadd.f32 %v1040_v13, %v974_v12  ;;  %v597_v15 = vpop.f32.mrb[1].mxu0 }
 0x1c8   : > { %v598_v16 = vadd.f32 %v974_v12, %v597_v15  ;;  %v1041_v17 = vpop.f32.mrb[2].mxu0 }
 0x1c9   : > { %v609_v18 = vadd.f32 %v1041_v17, %v974_v12  ;;  %v600_v19 = vpop.f32.mrb[3].mxu0  ;;  %v614_v21 = vmax.f32 %v606_v14, 0.0 }
 0x1ca   : > { %v601_v20 = vadd.f32 %v974_v12, %v600_v19  ;;  %v612_v23 = vmax.f32 %v598_v16, 0.0 }
 0x1cb   : > { %v615_v22 = vmax.f32 %v609_v18, 0.0 }
 0x1cc   : > { %v613_v24 = vmax.f32 %v601_v20, 0.0 }
 0x1cd   : > { %v617_v25 = vpack.c.bf16 %v615_v22, %v614_v21 }
 0x1ce   : > { %v616_v26 = vpack.c.bf16 %v613_v24, %v612_v23 }
 0x1d0   : > { %1058 = vmatprep.mubr.bf16.mxu1 %v616_v26 }
 0x1d1   : > { %1059 = vmatmul.mubr.bf16.vlgmr.msra.gmra.mrb[0].mxu1 %v617_v25 }
 0x2a4   : > { %v1060_v28 = vpop.f32.mrb[0].mxu1 }
 0x2a5   : > { %v732_v29 = vadd.f32 %v1060_v28, %v981_v27  ;;  %v723_v30 = vpop.f32.mrb[1].mxu1 }
 0x2a6   : > { %v724_v31 = vadd.f32 %v981_v27, %v723_v30  ;;  %v1061_v32 = vpop.f32.mrb[2].mxu1 }
 0x2a7   : > { %v735_v33 = vadd.f32 %v1061_v32, %v981_v27  ;;  %v726_v34 = vpop.f32.mrb[3].mxu1  ;;  %v740_v36 = vmax.f32 %v732_v29, 0.0 }
 0x2a8   : > { %v727_v35 = vadd.f32 %v981_v27, %v726_v34  ;;  %v738_v38 = vmax.f32 %v724_v31, 0.0 }
 0x2a9   : > { %v741_v37 = vmax.f32 %v735_v33, 0.0 }
 0x2aa   : > { %v739_v39 = vmax.f32 %v727_v35, 0.0 }
 0x2ab   : > { %v750_v40 = vmax.f32 %v740_v36, %v741_v37 }
 0x2ac   : > { %v743_v41 = vmax.f32 %v738_v38, %v739_v39 }
 0x2ad   : > { %v751_v42 = vrot.slane %v750_v40, 4 }
 0x2ae   : > { %v744_v43 = vrot.slane %v743_v41, 4 }
 0x2af   : > { %v752_v44 = vmax.f32 %v750_v40, %v751_v42 }
 0x2b0   : > { %v745_v45 = vmax.f32 %v743_v41, %v744_v43 }
 0x2b1   : > { %v753_v46 = vrot.slane %v752_v44, 2 }
 0x2b2   : > { %v746_v47 = vrot.slane %v745_v45, 2 }
 0x2b3   : > { %v754_v48 = vmax.f32 %v752_v44, %v753_v46 }
 0x2b4   : > { %v747_v49 = vmax.f32 %v745_v45, %v746_v47 }
 0x2b5   : > { %v755_v50 = vrot.slane %v754_v48, 1 }
 0x2b6   : > { %v748_v51 = vrot.slane %v747_v49, 1 }
 0x2b7   : > { %v756_v52 = vmax.f32 %v754_v48, %v755_v50  ;;  %767 = sbr.rel (%p990_p10) target bundleno = 926 (0x39e), region = 106 }
 0x2b8   : > { %v749_v54 = vmax.f32 %v747_v49, %v748_v51 }
 0x2ba   : > { %v760_v55 = vsel %vm759_vm1, %v756_v52, %v749_v54 }
 0x2bb   : > { %v762_v56 = vmax.f32 %v742_v53, %v760_v55 }
 0x2bd   : > { %763 = vst [vmem:[#allocation2] sm:$0x3] %v762_v56 }
 0x2c4   : > { %v768_v2 = vld [vmem:[#allocation2] sm:$0x3] }
 0x2c5   : > { %v769_v3 = vpack.c.bf16 %v768_v2, %v768_v2 }
 0x2c7   : > { %1079 = vmatmul.mubr.bf16.vlgmr.msra.gmra.mrb[0].mxu0 %v769_v3 }
 0x39a   : > { %v875_v5 = vpop.f32.mrb[0].mxu0 }
 0x39b   : > { %v876_v6 = vadd.f32 %v991_v4, %v875_v5  ;;  %v1080_v7 = vpop.f32.mrb[1].mxu0 }
 0x39c   : > { %v878_v8 = vpop.f32.mrb[2].mxu0 }
 0x39d   : > { %881 = vst [vmem:[#allocation7] sm:$0x3] %v876_v6  ;;  %v1081_v9 = vpop.f32.mrb[3].mxu0 }
 0x39e PF: > { %s1561_s16 = sadd.s32 4294967295, %s1275_s13   ;;  %s1286_s22 = smov [#allocation7]  }
 0x39f   : > { %p1497_p12 = scmp.eq.s32.totalorder %s1561_s16, 3  ;;  %s891_s24 = sshll.u32 %s1286_s22, 4  ;;  %s892_s24 = int_to_ptr.vmem [resolvable:$true] %s891_s24 }
 0x3a0   : > { %s1203_s17 = scalar_lea.vmem %s892_s24, 32  ;;  %p1210_p4 = scmp.lt.s32.totalorder %s892_s24, %s892_s24 }
 0x3a1   : > { %p1204_p0 = scmp.ne.s32.totalorder %s892_s24, %s1203_s17  ;;  %p1211_p5 = scmp.lt.s32.totalorder %s1203_s17, %s1203_s17 }
 0x3a3   : > { %p1205_p1 = pnand %p1204_p0, %p1497_p12  ;;  %p1212_p6 = por %p1211_p5, %p1210_p4 }
 0x3a5   : > { %p1206_p2 = pneg %p1205_p1 }
 0x3a7   : > { %p1213_p9 = pnand %p1212_p6, %p1206_p2 }
 0x3a9   : > { %1216 = shalt.err (!%p1213_p9)
}
 0x3aa   : > { %s1217_s14 = scalar_lea.hbm %s1547_s9, 32 }
 0x3ab   : > { %p1218_p11 = scmp.ne.s32.totalorder %s1547_s9, %s1217_s14  ;;  %p1223_p7 = scmp.lt.u32.totalorder %s1217_s14, %s1547_s9 }
 0x3ad   : > { %p1219_p13 = pnand %p1218_p11, %p1497_p12 }
 0x3af   : > { %p1220_p3 = pneg %p1219_p13 }
 0x3b1   : > { %p1225_p8 = pnand %p1223_p7, %p1220_p3 }
 0x3b3   : > { %1228 = shalt.err (!%p1225_p8)
}
 0x3b4   : > { %1087 = dma.vmem_to_hbm [thread:$0]  (%p1497_p12), %s892_s24, 32, %s1547_s9, [#allocation6]  }
 0x3b5   : > { %1254 = dma.done.wait (%p1497_p12), [#allocation6], 32  }
 0x3b6   : > { %1256 = vsyncadd (%p1497_p12), [#allocation6], 4294967264 }
 0x3b7 PF: > { %s21_s13 = sadd.s32 1, %s1275_s13   ;;  %s1563_s28 = sld [smem:[#allocation10_spill]] }
 0x3b8   : > { %p18_p10 = scmp.ge.s32.totalorder %s21_s13, 6   ;;  %s1564_s30 = smov %s1263_s10 }
 0x3b9   : > { %s1565_s10 = smov %s1389_s21  ;;  %s1566_s11 = smov %s1271_s12 }
 0x3ba   :  { %20 = sbr.rel (!%p18_p10) target bundleno = 4 (0x4), region = 140 }
 0x3bd   : > { %s1567_s12 = smov %s1563_s28 }
 0x3c1   :  { %904 = vsyncpa [#allocation5], 1 }
 0x3c2   :  { %906 = vsyncpa [#allocation5 + $0x1], 1 }
 0x3c3   :  { %907 = vsyncpa [#allocation6], 1 }
 0x3c4   :  { %909 = vsyncpa [#allocation6 + $0x1], 1 }

</bundles_post_ra>
